<compile_context>
chip_gen: v7x
topology: tpu7x:2x2x1
jax: 0.10.0
libtpu: 0.0.40
codegen_flags: <defaults>
</compile_context>

<pallas_src>
import functools

import jax
import jax.numpy as jnp
from jax.experimental import pallas as pl
from jax.experimental.pallas import tpu as pltpu


def _round_up(v, m):
    return ((v + m - 1) // m) * m


# ----------------------------- packed layouts --------------------------------

def _build_layout(input_size, layers, latents, hidden_size):
    L0, L1 = layers
    Z0, Z1 = latents
    # (name, in_dim, out_dim) for every Linear used by forward().
    w_dims = (
        ("e0",  input_size,  L0),
        ("we0", L0,          Z0),
        ("e1",  L0,          L1),
        ("we1", L1,          Z1),
        ("wd1", Z1,          Z0),     # decoder W['d1']
        ("r0",  Z0,          100),
        ("r1",  100,         hidden_size),
        ("r2",  hidden_size, input_size),
    )
    # weight slab: row-concatenate, each block's row start aligned to 8 sublanes
    w_off, row = {}, 0
    for name, din, dout in w_dims:
        w_off[name] = row
        row += _round_up(din, 8)
    w_rows = _round_up(row, 8)
    w_cols = _round_up(max(d for _, _, d in w_dims), 128)

    # bias slab: lane-concatenate
    b_off, off = {}, 0
    for name, _, dout in w_dims:
        b_off[name] = off
        off += dout
    b_cols = _round_up(off, 128)

    # activation input slab: [x | noise_top | noise_mid | pad]
    act_off = {"x": 0, "noise_top": input_size, "noise_mid": input_size + Z1}
    act_cols = _round_up(input_size + Z1 + Z0, 128)

    # packed output slab
    out_segs = (("x", input_size), ("e_mu0", Z0), ("e_lv0", Z0),
                ("e_mu1", Z1), ("e_lv1", Z1), ("p_mu0", Z0), ("p_lv0", Z0),
                ("d_mu0", Z0), ("d_lv0", Z0))
    out_off, off = {}, 0
    for name, width in out_segs:
        out_off[name] = (off, width)
        off += width
    out_cols = _round_up(off, 128)

    return dict(w_dims=w_dims, w_off=w_off, w_rows=w_rows, w_cols=w_cols,
                b_off=b_off, b_cols=b_cols, act_off=act_off, act_cols=act_cols,
                out_off=out_off, out_cols=out_cols, out_used=off)


# ----------------------------- kernel -----------------------------------------

def _make_hvae_kernel(layout, alphabet_size, seq_len, latents, tb):
    A, S = alphabet_size, seq_len
    Z0, Z1 = latents
    IN = A * S
    w_dims = {name: (din, dout) for name, din, dout in layout["w_dims"]}
    w_off, b_off = layout["w_off"], layout["b_off"]
    act_off = layout["act_off"]
    out_cols, out_used = layout["out_cols"], layout["out_used"]

    def kernel(act_ref, w_ref, b_ref, out_ref):
        def linear(h, name):
            din, dout = w_dims[name]
            r0 = w_off[name]
            w = w_ref[r0:r0 + din, 0:dout]                    # static slice: free
            b = b_ref[:, b_off[name]:b_off[name] + dout]
            return jnp.dot(h, w, preferred_element_type=jnp.float32) + b

        def lrelu(v):                       # torch.nn.LeakyReLU default slope 0.01
            return jnp.where(v > 0, v, 0.01 * v)

        softplus = jax.nn.softplus

        x = act_ref[:, act_off["x"]:act_off["x"] + IN]
        noise_top = act_ref[:, act_off["noise_top"]:act_off["noise_top"] + Z1]
        noise_mid = act_ref[:, act_off["noise_mid"]:act_off["noise_mid"] + Z0]

        # ---------------- encoder ----------------
        h = lrelu(linear(x, "e0"))
        e_mu0 = linear(h, "we0")
        e_lv0 = softplus(e_mu0)
        h = lrelu(linear(h, "e1"))
        e_mu1 = linear(h, "we1")
        e_lv1 = softplus(e_mu1)

        # ------------- decoder, top level: d_mu1 = e_mu1, d_lv1 = e_lv1 -------------
        z = e_mu1 + noise_top * jnp.exp(0.5 * e_lv1)

        # ------------- decoder, level 0 (uses W['d1']) -------------
        p_mu0 = linear(z, "wd1")
        p_lv0 = softplus(p_mu0)

        # eq_21 with sigma1 = exp(0.5*e_lv0), sigma2 = exp(0.5*p_lv0)
        s1sq = jnp.exp(-e_lv0)              # 1 / sigma1^2
        s2sq = jnp.exp(-p_lv0)              # 1 / sigma2^2
        denom = s1sq + s2sq
        inv_denom = 1.0 / denom             # computed once, reused (exact, as in ref)
        d_mu0 = (e_mu0 * s1sq + p_mu0 * s2sq) * inv_denom
        d_lv0 = jnp.log(inv_denom + 1e-8)   # log(sigma + 1e-8), sigma = 1/denom
        z = d_mu0 + noise_mid * jnp.exp(0.5 * d_lv0)

        # ---------------- reconstruct MLP ----------------
        r = lrelu(linear(z, "r0"))
        r = lrelu(linear(r, "r1"))
        r = linear(r, "r2")                 # (tb, A*S), flat index = a*S + s

        # log_softmax over the alphabet axis (dim=1 after view(B, A, S)):
        # single reduction to width S, then one full-width subtraction.
        m = r[:, 0:S]
        for a in range(1, A):
            m = jnp.maximum(m, r[:, a * S:(a + 1) * S])
        ssum = jnp.exp(r[:, 0:S] - m)
        for a in range(1, A):
            ssum = ssum + jnp.exp(r[:, a * S:(a + 1) * S] - m)
        logz = m + jnp.log(ssum)
        x_rec = r - jnp.concatenate([logz] * A, axis=1)

        # ---------- single lane-dense store of all kernel outputs ----------
        pieces = [x_rec, e_mu0, e_lv0, e_mu1, e_lv1, p_mu0, p_lv0, d_mu0, d_lv0]
        pad = out_cols - out_used
        if pad:
            pieces.append(jnp.zeros((tb, pad), jnp.float32))
        out_ref[...] = jnp.concatenate(pieces, axis=1)

    return kernel


# ----------------------------- wrapper -----------------------------------------

def hvae_forward(x, params, noise_top, noise_mid, *, alphabet_size, seq_len,
                 layers, latents, hidden_size):
    A, S = alphabet_size, seq_len
    IN = A * S
    Z0, Z1 = latents
    B = x.shape[0]
    f32 = jnp.float32
    layout = _build_layout(IN, layers, latents, hidden_size)

    # batch padding / tiling: sublane-aligned; grid over batch (parallel) for v7x
    B_pad = _round_up(max(B, 8), 8)
    if B_pad > 128:
        B_pad = _round_up(B_pad, 128)
        TB = 128
    else:
        TB = B_pad
    grid = (B_pad // TB,)

    # packed activation slab: [x | noise_top | noise_mid | 0-pad]
    act = jnp.zeros((B_pad, layout["act_cols"]), f32)
    act = act.at[:B, 0:IN].set(x.reshape(B, IN).astype(f32))
    o_nt = layout["act_off"]["noise_top"]
    o_nm = layout["act_off"]["noise_mid"]
    act = act.at[:B, o_nt:o_nt + Z1].set(noise_top.astype(f32))
    act = act.at[:B, o_nm:o_nm + Z0].set(noise_mid.astype(f32))

    # packed parameter slabs (one weight slab + one bias slab)
    w_slab = jnp.zeros((layout["w_rows"], layout["w_cols"]), f32)
    b_slab = jnp.zeros((1, layout["b_cols"]), f32)
    for name, din, dout in layout["w_dims"]:
        r0 = layout["w_off"][name]
        w_slab = w_slab.at[r0:r0 + din, 0:dout].set(params[name + "_w"].astype(f32))
        o0 = layout["b_off"][name]
        b_slab = b_slab.at[:, o0:o0 + dout].set(
            params[name + "_b"].reshape(1, dout).astype(f32))

    kernel = _make_hvae_kernel(layout, A, S, latents, TB)

    packed = pl.pallas_call(
        kernel,
        out_shape=jax.ShapeDtypeStruct((B_pad, layout["out_cols"]), f32),
        grid=grid,
        in_specs=[
            pl.BlockSpec((TB, layout["act_cols"]), lambda i: (i, 0)),
            pl.BlockSpec((layout["w_rows"], layout["w_cols"]), lambda i: (0, 0)),
            pl.BlockSpec((1, layout["b_cols"]), lambda i: (0, 0)),
        ],
        out_specs=pl.BlockSpec((TB, layout["out_cols"]), lambda i: (i, 0)),
        compiler_params=pltpu.CompilerParams(dimension_semantics=("parallel",)),
    )(act, w_slab, b_slab)

    packed = packed[:B]

    def seg(name):
        o, w = layout["out_off"][name]
        return packed[:, o:o + w]

    x_rec = seg("x").reshape(B, A, S)
    e_mu = [seg("e_mu0"), seg("e_mu1")]
    e_logvar = [seg("e_lv0"), seg("e_lv1")]
    # constant top-level priors built outside the kernel
    # (matches torch.zeros_like / torch.eye(batch, latents[-1]) in the reference)
    p_mu = [seg("p_mu0"), jnp.zeros((B, Z1), f32)]
    p_logvar = [seg("p_lv0"), jnp.eye(B, Z1, dtype=f32)]
    d_mu = [seg("d_mu0"), e_mu[1]]
    d_logvar = [seg("d_lv0"), e_logvar[1]]
    return x_rec, e_mu, e_logvar, p_mu, p_logvar, d_mu, d_logvar


# ----------------------------- param init --------------------------------------

def _xavier(key, fan_in, fan_out):
    std = (2.0 / (fan_in + fan_out)) ** 0.5
    return jax.random.normal(key, (fan_in, fan_out), jnp.float32) * std


def init_params(key, *, input_size, layers, latents, hidden_size):
    ks = jax.random.split(key, 8)
    L0, L1 = layers
    Z0, Z1 = latents
    f32 = jnp.float32
    return {
        # encoder level 0 (bias -20 per the 'e0' override in __init__)
        "e0_w": _xavier(ks[0], input_size, L0),
        "e0_b": jnp.full((1, L0), -20.0, f32),
        "we0_w": _xavier(ks[1], L0, Z0),
        "we0_b": jnp.full((1, Z0), -20.0, f32),
        # encoder level 1 (bias -5)
        "e1_w": _xavier(ks[2], L0, L1),
        "e1_b": jnp.full((1, L1), -5.0, f32),
        "we1_w": _xavier(ks[3], L1, Z1),
        "we1_b": jnp.full((1, Z1), -5.0, f32),
        # decoder W['d1'] (bias -10); W['d0'] / upscale['d1'] unused in forward()
        "wd1_w": _xavier(ks[4], Z1, Z0),
        "wd1_b": jnp.full((1, Z0), -10.0, f32),
        # reconstruct: Linear(Z0,100) -> LReLU -> Linear(100,hidden) -> LReLU
        #              -> Linear(hidden, input_size)   (biases -5)
        "r0_w": _xavier(ks[5], Z0, 100),
        "r0_b": jnp.full((1, 100), -5.0, f32),
        "r1_w": _xavier(ks[6], 100, hidden_size),
        "r1_b": jnp.full((1, hidden_size), -5.0, f32),
        "r2_w": _xavier(ks[7], hidden_size, input_size),
        "r2_b": jnp.full((1, input_size), -5.0, f32),
    }


# ----------------------------- main ---------------------------------------------

if __name__ == "__main__":
    alphabet_size = 4
    seq_len = 8
    input_size = alphabet_size * seq_len      # 32
    layers = [32, 16]
    latents = [16, 8]
    hidden_size = 32
    batch = 2

    key = jax.random.PRNGKey(0)
    k_x, k_p, k_n1, k_n2 = jax.random.split(key, 4)

    x = jax.random.normal(k_x, (batch, alphabet_size, seq_len), jnp.float32)
    params = init_params(k_p, input_size=input_size, layers=layers,
                         latents=latents, hidden_size=hidden_size)

    # deterministic stand-ins for torch.randn_like in the two samplers
    noise_top = jax.random.normal(k_n1, (batch, latents[1]), jnp.float32)
    noise_mid = jax.random.normal(k_n2, (batch, latents[0]), jnp.float32)

    fwd = jax.jit(functools.partial(
        hvae_forward, alphabet_size=alphabet_size, seq_len=seq_len,
        layers=layers, latents=latents, hidden_size=hidden_size))
    outs = fwd(x, params, noise_top, noise_mid)
    jax.block_until_ready(outs)

    x_hat, e_mu, e_logvar, p_mu, p_logvar, d_mu, d_logvar = outs
    assert x_hat.shape == (batch, alphabet_size, seq_len)
    # log_softmax over the alphabet axis must normalize in prob space
    assert jnp.allclose(jnp.exp(x_hat).sum(axis=1), 1.0, atol=1e-5)
    assert all(a.shape == (batch, latents[i])
               for lst in (e_mu, e_logvar, p_mu, p_logvar, d_mu, d_logvar)
               for i, a in enumerate(lst))
    assert all(bool(jnp.all(jnp.isfinite(a)))
               for a in jax.tree_util.tree_leaves(outs))

    print("KERNEL_OK")
</pallas_src>

<mosaic_0001>
module attributes {stable_mosaic.version = 11 : i64} {
  func.func @kernel(%arg0: i32, %arg1: memref<8x128xf32, #tpu.memory_space<vmem>>, %arg2: memref<272x128xf32, #tpu.memory_space<vmem>>, %arg3: memref<1x256xf32, #tpu.memory_space<vmem>>, %arg4: memref<8x256xf32, #tpu.memory_space<vmem>>) attributes {dimension_semantics = [#tpu.dimension_semantics<parallel>], iteration_bounds = array<i64: 1>, scalar_prefetch = 0 : i64, scratch_operands = 0 : i64, tpu.core_type = #tpu.core_type<tc>, window_params = [{transform_indices = @transform_0, window_bounds = array<i64: 8, 128>}, {pipeline_mode = #tpu.pipeline_mode<synchronous>, transform_indices = @transform_1, window_bounds = array<i64: 272, 128>}, {pipeline_mode = #tpu.pipeline_mode<synchronous>, transform_indices = @transform_2, window_bounds = array<i64: 1, 256>}, {transform_indices = @transform_3, window_bounds = array<i64: 8, 256>}]} {
    %c0 = arith.constant 0 : index
    %c0_0 = arith.constant 0 : index
    %0 = vector.load %arg1[%c0, %c0_0] : memref<8x128xf32, #tpu.memory_space<vmem>>, vector<8x32xf32>
    %c0_1 = arith.constant 0 : index
    %c32 = arith.constant 32 : index
    %1 = vector.load %arg1[%c0_1, %c32] : memref<8x128xf32, #tpu.memory_space<vmem>>, vector<8x8xf32>
    %c0_2 = arith.constant 0 : index
    %c40 = arith.constant 40 : index
    %2 = vector.load %arg1[%c0_2, %c40] : memref<8x128xf32, #tpu.memory_space<vmem>>, vector<8x16xf32>
    %c0_3 = arith.constant 0 : index
    %c0_4 = arith.constant 0 : index
    %3 = vector.load %arg2[%c0_3, %c0_4] : memref<272x128xf32, #tpu.memory_space<vmem>>, vector<32x32xf32>
    %c0_5 = arith.constant 0 : index
    %c0_6 = arith.constant 0 : index
    %4 = vector.load %arg3[%c0_5, %c0_6] : memref<1x256xf32, #tpu.memory_space<vmem>>, vector<1x32xf32>
    %cst = arith.constant dense<0.000000e+00> : vector<8x32xf32>
    %5 = tpu.matmul %0, %3, %cst {dimension_numbers = #tpu.dot_dimension_numbers<[1], [0], [0], [1], [0, 0, 1, 1], [], []>} : vector<8x32xf32>, vector<32x32xf32>, vector<8x32xf32> -> vector<8x32xf32>
    %6 = vector.broadcast %4 : vector<1x32xf32> to vector<8x32xf32>
    %7 = arith.addf %5, %6 : vector<8x32xf32>
    %cst_7 = arith.constant 0.000000e+00 : f32
    %8 = vector.broadcast %cst_7 : f32 to vector<8x32xf32>
    %9 = arith.cmpf ogt, %7, %8 : vector<8x32xf32>
    %cst_8 = arith.constant 0.00999999977 : f32
    %10 = vector.broadcast %cst_8 : f32 to vector<8x32xf32>
    %11 = arith.mulf %10, %7 : vector<8x32xf32>
    %12 = arith.select %9, %7, %11 : vector<8x32xi1>, vector<8x32xf32>
    %c32_9 = arith.constant 32 : index
    %c0_10 = arith.constant 0 : index
    %13 = vector.load %arg2[%c32_9, %c0_10] : memref<272x128xf32, #tpu.memory_space<vmem>>, vector<32x16xf32>
    %c0_11 = arith.constant 0 : index
    %c32_12 = arith.constant 32 : index
    %14 = vector.load %arg3[%c0_11, %c32_12] : memref<1x256xf32, #tpu.memory_space<vmem>>, vector<1x16xf32>
    %cst_13 = arith.constant dense<0.000000e+00> : vector<8x16xf32>
    %15 = tpu.matmul %12, %13, %cst_13 {dimension_numbers = #tpu.dot_dimension_numbers<[1], [0], [0], [1], [0, 0, 1, 1], [], []>} : vector<8x32xf32>, vector<32x16xf32>, vector<8x16xf32> -> vector<8x16xf32>
    %16 = vector.broadcast %14 : vector<1x16xf32> to vector<8x16xf32>
    %17 = arith.addf %15, %16 : vector<8x16xf32>
    %cst_14 = arith.constant 0.000000e+00 : f32
    %18 = vector.broadcast %cst_14 : f32 to vector<8x16xf32>
    %19 = arith.maximumf %17, %18 : vector<8x16xf32>
    %20 = vector.broadcast %cst_14 : f32 to vector<8x16xf32>
    %21 = arith.subf %17, %20 : vector<8x16xf32>
    %22 = arith.cmpf one, %21, %21 : vector<8x16xf32>
    %23 = vector.broadcast %cst_14 : f32 to vector<8x16xf32>
    %24 = arith.addf %17, %23 : vector<8x16xf32>
    %25 = math.absf %21 : vector<8x16xf32>
    %cst_15 = arith.constant 0.000000e+00 : f32
    %26 = vector.broadcast %cst_15 : f32 to vector<8x16xf32>
    %27 = arith.subf %26, %25 : vector<8x16xf32>
    %28 = math.exp %27 : vector<8x16xf32>
    %29 = math.log1p %28 : vector<8x16xf32>
    %30 = arith.addf %19, %29 : vector<8x16xf32>
    %31 = arith.select %22, %24, %30 : vector<8x16xi1>, vector<8x16xf32>
    %c64 = arith.constant 64 : index
    %c0_16 = arith.constant 0 : index
    %32 = vector.load %arg2[%c64, %c0_16] : memref<272x128xf32, #tpu.memory_space<vmem>>, vector<32x16xf32>
    %c0_17 = arith.constant 0 : index
    %c48 = arith.constant 48 : index
    %33 = vector.load %arg3[%c0_17, %c48] : memref<1x256xf32, #tpu.memory_space<vmem>>, vector<1x16xf32>
    %cst_18 = arith.constant dense<0.000000e+00> : vector<8x16xf32>
    %34 = tpu.matmul %12, %32, %cst_18 {dimension_numbers = #tpu.dot_dimension_numbers<[1], [0], [0], [1], [0, 0, 1, 1], [], []>} : vector<8x32xf32>, vector<32x16xf32>, vector<8x16xf32> -> vector<8x16xf32>
    %35 = vector.broadcast %33 : vector<1x16xf32> to vector<8x16xf32>
    %36 = arith.addf %34, %35 : vector<8x16xf32>
    %cst_19 = arith.constant 0.000000e+00 : f32
    %37 = vector.broadcast %cst_19 : f32 to vector<8x16xf32>
    %38 = arith.cmpf ogt, %36, %37 : vector<8x16xf32>
    %cst_20 = arith.constant 0.00999999977 : f32
    %39 = vector.broadcast %cst_20 : f32 to vector<8x16xf32>
    %40 = arith.mulf %39, %36 : vector<8x16xf32>
    %41 = arith.select %38, %36, %40 : vector<8x16xi1>, vector<8x16xf32>
    %c96 = arith.constant 96 : index
    %c0_21 = arith.constant 0 : index
    %42 = vector.load %arg2[%c96, %c0_21] : memref<272x128xf32, #tpu.memory_space<vmem>>, vector<16x8xf32>
    %c0_22 = arith.constant 0 : index
    %c64_23 = arith.constant 64 : index
    %43 = vector.load %arg3[%c0_22, %c64_23] : memref<1x256xf32, #tpu.memory_space<vmem>>, vector<1x8xf32>
    %cst_24 = arith.constant dense<0.000000e+00> : vector<8x8xf32>
    %44 = tpu.matmul %41, %42, %cst_24 {dimension_numbers = #tpu.dot_dimension_numbers<[1], [0], [0], [1], [0, 0, 1, 1], [], []>} : vector<8x16xf32>, vector<16x8xf32>, vector<8x8xf32> -> vector<8x8xf32>
    %45 = vector.broadcast %43 : vector<1x8xf32> to vector<8x8xf32>
    %46 = arith.addf %44, %45 : vector<8x8xf32>
    %cst_25 = arith.constant 0.000000e+00 : f32
    %47 = vector.broadcast %cst_25 : f32 to vector<8x8xf32>
    %48 = arith.maximumf %46, %47 : vector<8x8xf32>
    %49 = vector.broadcast %cst_25 : f32 to vector<8x8xf32>
    %50 = arith.subf %46, %49 : vector<8x8xf32>
    %51 = arith.cmpf one, %50, %50 : vector<8x8xf32>
    %52 = vector.broadcast %cst_25 : f32 to vector<8x8xf32>
    %53 = arith.addf %46, %52 : vector<8x8xf32>
    %54 = math.absf %50 : vector<8x8xf32>
    %cst_26 = arith.constant 0.000000e+00 : f32
    %55 = vector.broadcast %cst_26 : f32 to vector<8x8xf32>
    %56 = arith.subf %55, %54 : vector<8x8xf32>
    %57 = math.exp %56 : vector<8x8xf32>
    %58 = math.log1p %57 : vector<8x8xf32>
    %59 = arith.addf %48, %58 : vector<8x8xf32>
    %60 = arith.select %51, %53, %59 : vector<8x8xi1>, vector<8x8xf32>
    %cst_27 = arith.constant 5.000000e-01 : f32
    %61 = vector.broadcast %cst_27 : f32 to vector<8x8xf32>
    %62 = arith.mulf %61, %60 : vector<8x8xf32>
    %63 = math.exp %62 : vector<8x8xf32>
    %64 = arith.mulf %1, %63 : vector<8x8xf32>
    %65 = arith.addf %46, %64 : vector<8x8xf32>
    %c112 = arith.constant 112 : index
    %c0_28 = arith.constant 0 : index
    %66 = vector.load %arg2[%c112, %c0_28] : memref<272x128xf32, #tpu.memory_space<vmem>>, vector<8x16xf32>
    %c0_29 = arith.constant 0 : index
    %c72 = arith.constant 72 : index
    %67 = vector.load %arg3[%c0_29, %c72] : memref<1x256xf32, #tpu.memory_space<vmem>>, vector<1x16xf32>
    %cst_30 = arith.constant dense<0.000000e+00> : vector<8x16xf32>
    %68 = tpu.matmul %65, %66, %cst_30 {dimension_numbers = #tpu.dot_dimension_numbers<[1], [0], [0], [1], [0, 0, 1, 1], [], []>} : vector<8x8xf32>, vector<8x16xf32>, vector<8x16xf32> -> vector<8x16xf32>
    %69 = vector.broadcast %67 : vector<1x16xf32> to vector<8x16xf32>
    %70 = arith.addf %68, %69 : vector<8x16xf32>
    %cst_31 = arith.constant 0.000000e+00 : f32
    %71 = vector.broadcast %cst_31 : f32 to vector<8x16xf32>
    %72 = arith.maximumf %70, %71 : vector<8x16xf32>
    %73 = vector.broadcast %cst_31 : f32 to vector<8x16xf32>
    %74 = arith.subf %70, %73 : vector<8x16xf32>
    %75 = arith.cmpf one, %74, %74 : vector<8x16xf32>
    %76 = vector.broadcast %cst_31 : f32 to vector<8x16xf32>
    %77 = arith.addf %70, %76 : vector<8x16xf32>
    %78 = math.absf %74 : vector<8x16xf32>
    %cst_32 = arith.constant 0.000000e+00 : f32
    %79 = vector.broadcast %cst_32 : f32 to vector<8x16xf32>
    %80 = arith.subf %79, %78 : vector<8x16xf32>
    %81 = math.exp %80 : vector<8x16xf32>
    %82 = math.log1p %81 : vector<8x16xf32>
    %83 = arith.addf %72, %82 : vector<8x16xf32>
    %84 = arith.select %75, %77, %83 : vector<8x16xi1>, vector<8x16xf32>
    %cst_33 = arith.constant 0.000000e+00 : f32
    %85 = vector.broadcast %cst_33 : f32 to vector<8x16xf32>
    %86 = arith.subf %85, %31 : vector<8x16xf32>
    %87 = math.exp %86 : vector<8x16xf32>
    %cst_34 = arith.constant 0.000000e+00 : f32
    %88 = vector.broadcast %cst_34 : f32 to vector<8x16xf32>
    %89 = arith.subf %88, %84 : vector<8x16xf32>
    %90 = math.exp %89 : vector<8x16xf32>
    %91 = arith.addf %87, %90 : vector<8x16xf32>
    %cst_35 = arith.constant 1.000000e+00 : f32
    %92 = vector.broadcast %cst_35 : f32 to vector<8x16xf32>
    %93 = arith.divf %92, %91 : vector<8x16xf32>
    %94 = arith.mulf %17, %87 : vector<8x16xf32>
    %95 = arith.mulf %70, %90 : vector<8x16xf32>
    %96 = arith.addf %94, %95 : vector<8x16xf32>
    %97 = arith.mulf %96, %93 : vector<8x16xf32>
    %cst_36 = arith.constant 9.99999993E-9 : f32
    %98 = vector.broadcast %cst_36 : f32 to vector<8x16xf32>
    %99 = arith.addf %93, %98 : vector<8x16xf32>
    %100 = math.log %99 : vector<8x16xf32>
    %cst_37 = arith.constant 5.000000e-01 : f32
    %101 = vector.broadcast %cst_37 : f32 to vector<8x16xf32>
    %102 = arith.mulf %101, %100 : vector<8x16xf32>
    %103 = math.exp %102 : vector<8x16xf32>
    %104 = arith.mulf %2, %103 : vector<8x16xf32>
    %105 = arith.addf %97, %104 : vector<8x16xf32>
    %c120 = arith.constant 120 : index
    %c0_38 = arith.constant 0 : index
    %106 = vector.load %arg2[%c120, %c0_38] : memref<272x128xf32, #tpu.memory_space<vmem>>, vector<16x100xf32>
    %c0_39 = arith.constant 0 : index
    %c88 = arith.constant 88 : index
    %107 = vector.load %arg3[%c0_39, %c88] : memref<1x256xf32, #tpu.memory_space<vmem>>, vector<1x100xf32>
    %cst_40 = arith.constant dense<0.000000e+00> : vector<8x100xf32>
    %108 = tpu.matmul %105, %106, %cst_40 {dimension_numbers = #tpu.dot_dimension_numbers<[1], [0], [0], [1], [0, 0, 1, 1], [], []>} : vector<8x16xf32>, vector<16x100xf32>, vector<8x100xf32> -> vector<8x100xf32>
    %109 = vector.broadcast %107 : vector<1x100xf32> to vector<8x100xf32>
    %110 = arith.addf %108, %109 : vector<8x100xf32>
    %cst_41 = arith.constant 0.000000e+00 : f32
    %111 = vector.broadcast %cst_41 : f32 to vector<8x100xf32>
    %112 = arith.cmpf ogt, %110, %111 : vector<8x100xf32>
    %cst_42 = arith.constant 0.00999999977 : f32
    %113 = vector.broadcast %cst_42 : f32 to vector<8x100xf32>
    %114 = arith.mulf %113, %110 : vector<8x100xf32>
    %115 = arith.select %112, %110, %114 : vector<8x100xi1>, vector<8x100xf32>
    %c136 = arith.constant 136 : index
    %c0_43 = arith.constant 0 : index
    %116 = vector.load %arg2[%c136, %c0_43] : memref<272x128xf32, #tpu.memory_space<vmem>>, vector<100x32xf32>
    %c0_44 = arith.constant 0 : index
    %c188 = arith.constant 188 : index
    %117 = vector.load %arg3[%c0_44, %c188] : memref<1x256xf32, #tpu.memory_space<vmem>>, vector<1x32xf32>
    %cst_45 = arith.constant dense<0.000000e+00> : vector<8x32xf32>
    %118 = tpu.matmul %115, %116, %cst_45 {dimension_numbers = #tpu.dot_dimension_numbers<[1], [0], [0], [1], [0, 0, 1, 1], [], []>} : vector<8x100xf32>, vector<100x32xf32>, vector<8x32xf32> -> vector<8x32xf32>
    %119 = vector.broadcast %117 : vector<1x32xf32> to vector<8x32xf32>
    %120 = arith.addf %118, %119 : vector<8x32xf32>
    %cst_46 = arith.constant 0.000000e+00 : f32
    %121 = vector.broadcast %cst_46 : f32 to vector<8x32xf32>
    %122 = arith.cmpf ogt, %120, %121 : vector<8x32xf32>
    %cst_47 = arith.constant 0.00999999977 : f32
    %123 = vector.broadcast %cst_47 : f32 to vector<8x32xf32>
    %124 = arith.mulf %123, %120 : vector<8x32xf32>
    %125 = arith.select %122, %120, %124 : vector<8x32xi1>, vector<8x32xf32>
    %c240 = arith.constant 240 : index
    %c0_48 = arith.constant 0 : index
    %126 = vector.load %arg2[%c240, %c0_48] : memref<272x128xf32, #tpu.memory_space<vmem>>, vector<32x32xf32>
    %c0_49 = arith.constant 0 : index
    %c220 = arith.constant 220 : index
    %127 = vector.load %arg3[%c0_49, %c220] : memref<1x256xf32, #tpu.memory_space<vmem>>, vector<1x32xf32>
    %cst_50 = arith.constant dense<0.000000e+00> : vector<8x32xf32>
    %128 = tpu.matmul %125, %126, %cst_50 {dimension_numbers = #tpu.dot_dimension_numbers<[1], [0], [0], [1], [0, 0, 1, 1], [], []>} : vector<8x32xf32>, vector<32x32xf32>, vector<8x32xf32> -> vector<8x32xf32>
    %129 = vector.broadcast %127 : vector<1x32xf32> to vector<8x32xf32>
    %130 = arith.addf %128, %129 : vector<8x32xf32>
    %131 = vector.extract_strided_slice %130 {offsets = [0, 0], sizes = [8, 8], strides = [1, 1]} : vector<8x32xf32> to vector<8x8xf32>
    %132 = vector.extract_strided_slice %130 {offsets = [0, 8], sizes = [8, 8], strides = [1, 1]} : vector<8x32xf32> to vector<8x8xf32>
    %133 = arith.maximumf %131, %132 : vector<8x8xf32>
    %134 = vector.extract_strided_slice %130 {offsets = [0, 16], sizes = [8, 8], strides = [1, 1]} : vector<8x32xf32> to vector<8x8xf32>
    %135 = arith.maximumf %133, %134 : vector<8x8xf32>
    %136 = vector.extract_strided_slice %130 {offsets = [0, 24], sizes = [8, 8], strides = [1, 1]} : vector<8x32xf32> to vector<8x8xf32>
    %137 = arith.maximumf %135, %136 : vector<8x8xf32>
    %138 = vector.extract_strided_slice %130 {offsets = [0, 0], sizes = [8, 8], strides = [1, 1]} : vector<8x32xf32> to vector<8x8xf32>
    %139 = arith.subf %138, %137 : vector<8x8xf32>
    %140 = math.exp %139 : vector<8x8xf32>
    %141 = vector.extract_strided_slice %130 {offsets = [0, 8], sizes = [8, 8], strides = [1, 1]} : vector<8x32xf32> to vector<8x8xf32>
    %142 = arith.subf %141, %137 : vector<8x8xf32>
    %143 = math.exp %142 : vector<8x8xf32>
    %144 = arith.addf %140, %143 : vector<8x8xf32>
    %145 = vector.extract_strided_slice %130 {offsets = [0, 16], sizes = [8, 8], strides = [1, 1]} : vector<8x32xf32> to vector<8x8xf32>
    %146 = arith.subf %145, %137 : vector<8x8xf32>
    %147 = math.exp %146 : vector<8x8xf32>
    %148 = arith.addf %144, %147 : vector<8x8xf32>
    %149 = vector.extract_strided_slice %130 {offsets = [0, 24], sizes = [8, 8], strides = [1, 1]} : vector<8x32xf32> to vector<8x8xf32>
    %150 = arith.subf %149, %137 : vector<8x8xf32>
    %151 = math.exp %150 : vector<8x8xf32>
    %152 = arith.addf %148, %151 : vector<8x8xf32>
    %153 = math.log %152 : vector<8x8xf32>
    %154 = arith.addf %137, %153 : vector<8x8xf32>
    %155 = tpu.concatenate %154, %154, %154, %154 in 1 : vector<8x8xf32>, vector<8x8xf32>, vector<8x8xf32>, vector<8x8xf32> -> vector<8x32xf32>
    %156 = arith.subf %130, %155 : vector<8x32xf32>
    %cst_51 = arith.constant 0.000000e+00 : f32
    %157 = vector.broadcast %cst_51 : f32 to vector<8x112xf32>
    %158 = tpu.concatenate %156, %17, %31, %46, %60, %70, %84, %97, %100, %157 in 1 : vector<8x32xf32>, vector<8x16xf32>, vector<8x16xf32>, vector<8x8xf32>, vector<8x8xf32>, vector<8x16xf32>, vector<8x16xf32>, vector<8x16xf32>, vector<8x16xf32>, vector<8x112xf32> -> vector<8x256xf32>
    %c0_52 = arith.constant 0 : index
    %c0_53 = arith.constant 0 : index
    %159 = vector.load %arg4[%c0_52, %c0_53] : memref<8x256xf32, #tpu.memory_space<vmem>>, vector<8x256xf32>
    tpu.vector_store %arg4[%c0_52, %c0_53], %158 {strides = array<i32>} : memref<8x256xf32, #tpu.memory_space<vmem>>, vector<8x256xf32>,
    return
  }
  func.func @transform_0(%arg0: i32) -> (i32, i32) {
    %c0_i32 = arith.constant 0 : i32
    %c0_i32_0 = arith.constant 0 : i32
    return %arg0, %c0_i32 : i32, i32
  }
  func.func @transform_1(%arg0: i32) -> (i32, i32) {
    %c0_i32 = arith.constant 0 : i32
    %c0_i32_0 = arith.constant 0 : i32
    %c0_i32_1 = arith.constant 0 : i32
    return %c0_i32, %c0_i32_0 : i32, i32
  }
  func.func @transform_2(%arg0: i32) -> (i32, i32) {
    %c0_i32 = arith.constant 0 : i32
    %c0_i32_0 = arith.constant 0 : i32
    %c0_i32_1 = arith.constant 0 : i32
    return %c0_i32, %c0_i32_0 : i32, i32
  }
  func.func @transform_3(%arg0: i32) -> (i32, i32) {
    %c0_i32 = arith.constant 0 : i32
    %c0_i32_0 = arith.constant 0 : i32
    return %arg0, %c0_i32 : i32, i32
  }
}

</mosaic_0001>

<bundles_post_ra>
// kernel: hvae_forward.1
= control target key start
LH: loop header
LB: loop body
LE: loop exit
PB: predicated region body
PF: predicated region fallthrough
CT: control target
= control target key end

     0   :  { %v1157_v0 = vmov 0.0|0.0   ;;  %vm1158_vm0 = vmmov 0   ;;  %v1159_v4 = vmov 0.0   ;;  %vm26_vm1 = vcmask 261120   ;;  %s1160_s4 = smov 80   ;;  %s1161_s5 = smov 64   ;;  %s1453_s1 = inlined_call_operand.vmem [shape: f32[272,128], index: 1, kind: input, shape index: {}]   ;;  %s1454_s0 = inlined_call_operand.vmem [shape: f32[8,128], index: 0, kind: input, shape index: {}]   ;;  %s1455_s2 = inlined_call_operand.vmem [shape: f32[1,256], index: 2, kind: input, shape index: {}]   ;;  %s1456_s3 = inlined_call_operand.vmem [shape: f32[8,256], index: 3, kind: output, shape index: {}]  }
   0x1   :  { %1055 = vmatprep.subr.bf16.mxu0 %v1157_v0  ;;  %v15_v1 = vld [vmem:[%s1453_s1] sm:$0xff]  ;;  %v16_v2 = vld [vmem:[%s1453_s1 + $0x8] sm:$0xff]  ;;  %v17_v3 = vld [vmem:[%s1453_s1 + $0x10] sm:$0xff]  ;;  %971 = vmatprep.mubr.msk.f32.mxu0 %vm1158_vm0, %v1159_v4  ;;  %s1162_s6 = smov 96   ;;  %vm286_vm4 = vcmask 130048   ;;  %s1163_s21 = smov 32  }
   0x2   :  { %v1056_v5 = vpack.c.bf16 %v16_v2, %v15_v1  ;;  %v18_v6 = vld [vmem:[%s1453_s1 + $0x18] sm:$0xff]  ;;  %1073 = vmatprep.subr.bf16.mxu1 %v1157_v0  ;;  %1000 = vmatprep.mubr.msk.f32.mxu1 %vm1158_vm0, %v1159_v4  ;;  %v103_v8 = vld [vmem:[%s1453_s1 + $0x20] sm:$0xff]  ;;  %v104_v9 = vld [vmem:[%s1453_s1 + $0x28] sm:$0xff]  ;;  %s1164_s22 = smov 56   ;;  %vm395_vm7 = vcmask 64512   ;;  %s1166_s24 = smov 88  }
   0x3   :  { %v1059_v7 = vpack.c.bf16 %v18_v6, %v17_v3  ;;  %v1225_v10 = vld [vmem:[%s1454_s0] sm:$0xff]  ;;  %v1062_v11 = vpack.c.bf16 %v104_v9, %v103_v8  ;;  %v105_v12 = vld [vmem:[%s1453_s1 + $0x30] sm:$0xff]  ;;  %v106_v13 = vld [vmem:[%s1453_s1 + $0x38] sm:$0xff]  ;;  %s1165_s0 = smov 40   ;;  %vm637_vm12 = vcmask 1043456   ;;  %s1167_s16 = smov 68  }
   0x4   :  { %1057 = vmatpush3.bf16.msra.mxu0 %v1056_v5  ;;  %v1065_v14 = vpack.c.bf16 %v106_v13, %v105_v12  ;;  %v1243_v15 = vld [vmem:[%s1455_s2] ss:$0 sm:$0xff]  ;;  %v202_v18 = vld [vmem:[%s1453_s1 + $0x48] sm:$0xff]  ;;  %v203_v23 = vld [vmem:[%s1453_s1 + $0x50] sm:$0xff]  ;;  %vm532_vm13 = vcmask 326656   ;;  %vm633_vm15 = vcmask 818176  }
   0x5   :  { %1058 = vmatprep.subr.bf16.mxu0 %v1157_v0  ;;  %205 = vrot.lane.b32.xlu0 %v1243_v15, %s1160_s4  ;;  %v201_v17 = vld [vmem:[%s1453_s1 + $0x40] sm:$0xff]  ;;  %v204_v24 = vld [vmem:[%s1453_s1 + $0x58] sm:$0xff]  ;;  %v282_v28 = vld [vmem:[%s1453_s1 + $0x68] sm:$0xff]  ;;  %s1168_s20 = smov 36   ;;  %s1171_s23 = smov 104  }
   0x6   :  { %v1068_v22 = vpack.c.bf16 %v202_v18, %v201_v17  ;;  %v1071_v26 = vpack.c.bf16 %v204_v24, %v203_v23  ;;  %v281_v27 = vld [vmem:[%s1453_s1 + $0x60] sm:$0xff]  ;;  %v391_v59 = vld [vmem:[%s1453_s1 + $0x70] sm:$0xff]  ;;  %s1173_s25 = smov 8   ;;  %s1174_s26 = smov 24  }
   0x7   :  { %v1074_v29 = vpack.c.bf16 %v282_v28, %v281_v27  ;;  %s1175_s27 = smov 48  }
   0x8   :  { %1060 = vmatpush3.bf16.msra.mxu0 %v1059_v7 }
   0x9   :  { %1061 = vmatprep.subr.bf16.mxu0 %v1157_v0  ;;  %283 = vrot.lane.b32.xlu0 %v1243_v15, %s1161_s5 }
   0xa   :  { %1075 = vmatpush3.bf16.msra.mxu1 %v1074_v29 }
   0xb   :  { %972 = vmatmul.mubr.msk.f32.vlgmr.msra.gmra.mrb[0].mxu0 %vm26_vm1, %v1225_v10  ;;  %1003 = vmatprep.subr.mxu1 %v1159_v4 }
   0xc   :  { %1063 = vmatpush3.bf16.msra.mxu0 %v1062_v11  ;;  %982 = vmatprep.mubr.msk.f32.mxu0 %vm1158_vm0, %v1159_v4 }
   0xd   :  { %1064 = vmatprep.subr.bf16.mxu0 %v1157_v0  ;;  %107 = vrot.lane.b32.xlu0 %v1243_v15, %s1162_s6 }
  0x10   :  { %1066 = vmatpush3.bf16.msra.mxu0 %v1065_v14 }
  0x11   :  { %1067 = vmatprep.subr.bf16.mxu0 %v1157_v0 }
  0x77   :  { %v206_v32 = vpop.permute.xlu0 %205 }
  0x7b   :  { %v284_v38 = vpop.permute.xlu0 %283 }
  0x7f   :  { %v108_v2 = vpop.permute.xlu0 %107 }
  0xde   :  { %v96_v16 = vpop.f32.mrb[0].mxu0 }
  0xdf   :  { %v97_v19 = vadd.f32 %v1243_v15, %v96_v16  ;;  %v973_v20 = vpop.f32.mrb[1].mxu0 }
  0xe1   :  { %vm100_vm2 = vcmp.gt.f32.partialorder %v97_v19, 0.0  ;;  %v101_v21 = vmul.f32 0.01, %v97_v19 }
  0xe3   :  { %v102_v25 = vsel %vm100_vm2, %v97_v19, %v101_v21  ;;  %vm859_vm2 = vcmask 195584  }
  0xe4   :  { %983 = vmatmul.mubr.msk.f32.vlgmr.msra.gmra.mrb[2].mxu0 %vm26_vm1, %v102_v25 }
  0xe5   :  { %1069 = vmatpush3.bf16.msra.mxu0 %v1068_v22  ;;  %993 = vmatprep.mubr.msk.f32.mxu0 %vm1158_vm0, %v1159_v4 }
  0xe6   :  { %1070 = vmatprep.subr.bf16.mxu0 %v1157_v0 }
  0xe9   :  { %1072 = vmatpush3.bf16.msra.mxu0 %v1071_v26 }
  0xea   :  { %1076 = vmatprep.subr.bf16.mxu0 %v1157_v0 }
  0xec   :  { %994 = vmatmul.mubr.msk.f32.vlgmr.msra.gmra.mrb[4].mxu0 %vm26_vm1, %v102_v25 }
  0xed   :  { %1012 = vmatprep.mubr.msk.f32.mxu0 %vm1158_vm0, %v1159_v4 }
 0x1b7   :  { %v179_v30 = vpop.f32.mrb[2].mxu0 }
 0x1b8   :  { %v984_v31 = vpop.f32.mrb[3].mxu0  ;;  %v1304_v3 = vadd.f32 %v179_v30, %v108_v2  ;;  %v611_v2 = vld [vmem:[%s1453_s1 + $0x88] sm:$0xff] }
 0x1ba   :  { %v186_v5 = vand.u32 2147483647, %v1304_v3  ;;  %v183_v27 = vmax.f32 %v1304_v3, 0.0  ;;  %vm184_vm9 = vcmp.ne.f32.partialorder %v1304_v3, %v1304_v3 }
 0x1bc   :  { %v187_v6 = vsub.f32 0.0, %v186_v5  ;;  %v612_v5 = vld [vmem:[%s1453_s1 + $0x90] sm:$0xff] }
 0x1be   :  { %v188_v7 = vmul.f32 1.442695, %v187_v6  ;;  %v1080_v6 = vpack.c.bf16 %v612_v5, %v611_v2 }
 0x1bf   :  { %v274_v33 = vpop.f32.mrb[4].mxu0 }
 0x1c0   :  { %v275_v34 = vadd.f32 %v274_v33, %v206_v32  ;;  %v995_v35 = vpop.f32.mrb[5].mxu0 }
 0x1c2   :  { %vm278_vm3 = vcmp.gt.f32.partialorder %v275_v34, 0.0  ;;  %v279_v36 = vmul.f32 0.01, %v275_v34 }
 0x1c4   :  { %v280_v37 = vsel %vm278_vm3, %v275_v34, %v279_v36  ;;  %vm891_vm3 = vcmask 392192  }
 0x1c5   :  { %1001 = vmatmul.mubr.msk.f32.vlgmr.msra.gmra.mrb[0].mxu1 %vm286_vm4, %v280_v37 }
 0x1c6   :  { %1005 = vmatprep.mubr.msk.f32.mxu1 %vm1158_vm0, %v1159_v4  ;;  %1004 = vmatpush3.msra.mxu1 %v391_v59 }
 0x1c7   :  { %1079 = vmatprep.subr.bf16.mxu1 %v1157_v0 }
 0x298   :  { %v356_v39 = vpop.f32.mrb[0].mxu1 }
 0x299   :  { %v1282_v40 = vadd.f32 %v356_v39, %v284_v38  ;;  %v1002_v41 = vpop.f32.mrb[1].mxu1 }
 0x29b   :  { %v363_v42 = vand.u32 2147483647, %v1282_v40  ;;  %v360_v53 = vmax.f32 %v1282_v40, 0.0  ;;  %vm361_vm6 = vcmp.ne.f32.partialorder %v1282_v40, %v1282_v40 }
 0x29d   :  { %v364_v43 = vsub.f32 0.0, %v363_v42 }
 0x29f   :  { %v365_v44 = vmul.f32 1.442695, %v364_v43 }
 0x2a1   :  { %1123 = vpow2.f32 %v365_v44 }
 0x2ab   :  { %v1124_v45 = vpop.eup %1123 }
 0x2ac   :  { %v367_v46 = vadd.f32 1.0, %v1124_v45  ;;  %v370_v47 = vmul.f32 -0.5, %v1124_v45  ;;  %v373_v49 = vand.u32 2147483647, %v1124_v45 }
 0x2ae   :  { %1125 = vlog2.f32 %v367_v46  ;;  %v371_v48 = vadd.f32 1.0, %v370_v47  ;;  %vm374_vm5 = vcmp.lt.f32.partialorder %v373_v49, 0.0004427343 }
 0x2b0   :  { %v372_v52 = vmul.f32 %v1124_v45, %v371_v48 }
 0x2b8   :  { %v1126_v50 = vpop.eup %1125 }
 0x2b9   :  { %v369_v51 = vmul.f32 0.6931472, %v1126_v50 }
 0x2bb   :  { %v375_v54 = vsel %vm374_vm5, %v372_v52, %v369_v51  ;;  %vm893_vm5 = vcmask 523264  }
 0x2bc   :  { %v376_v55 = vadd.f32 %v375_v54, %v360_v53 }
 0x2be   :  { %v1289_v56 = vsel %vm361_vm6, %v1282_v40, %v376_v55  ;;  %vm895_vm6 = vcmask 588800  }
 0x2bf   :  { %v378_v57 = vmul.f32 0.5, %v1289_v56 }
 0x2c1   :  { %v379_v58 = vmul.f32 1.442695, %v378_v57 }
 0x2c3   :  { %1127 = vpow2.f32 %v379_v58 }
 0x2c4   :  { %1129 = vpow2.f32 %v188_v7  ;;  %v613_v7 = vld [vmem:[%s1453_s1 + $0x98] sm:$0xff] }
 0x2cd   :  { %v1128_v60 = vpop.eup %1127 }
 0x2ce   :  { %382 = vrot.lane.b32.xlu1 %v1128_v60, %s1163_s21  ;;  %v1130_v9 = vpop.eup %1129  ;;  %v516_v60 = vld [vmem:[%s1453_s1 + $0x78] sm:$0xff] }
 0x2cf   :  { %v190_v14 = vadd.f32 1.0, %v1130_v9  ;;  %v193_v18 = vmul.f32 -0.5, %v1130_v9  ;;  %v196_v22 = vand.u32 2147483647, %v1130_v9 }
 0x2d1   :  { %1131 = vlog2.f32 %v190_v14  ;;  %v194_v20 = vadd.f32 1.0, %v193_v18  ;;  %vm197_vm8 = vcmp.lt.f32.partialorder %v196_v22, 0.0004427343  ;;  %v618_v22 = vld [vmem:[%s1453_s1 + $0xc0] sm:$0xff] }
 0x2d3   :  { %v195_v25 = vmul.f32 %v1130_v9, %v194_v20 }
 0x2db   :  { %v1132_v19 = vpop.eup %1131 }
 0x2dc   :  { %v192_v23 = vmul.f32 0.6931472, %v1132_v19 }
 0x2de   :  { %v198_v26 = vsel %vm197_vm8, %v195_v25, %v192_v23  ;;  %vm897_vm8 = vcmask 654336  }
 0x2df   :  { %v199_v29 = vadd.f32 %v198_v26, %v183_v27  ;;  %v619_v26 = vld [vmem:[%s1453_s1 + $0xc8] sm:$0xff]  ;;  %v620_v27 = vld [vmem:[%s1453_s1 + $0xd0] sm:$0xff] }
 0x2e1   :  { %v1314_v32 = vsel %vm184_vm9, %v1304_v3, %v199_v29  ;;  %vm899_vm9 = vcmask 785408  }
 0x2e2   :  { %v487_v36 = vsub.f32 0.0, %v1314_v32 }
 0x2e4   :  { %v488_v41 = vmul.f32 1.442695, %v487_v36  ;;  %v714_v36 = vld [vmem:[%s1453_s1 + $0xf0] sm:$0xff] }
 0x340   :  { %v383_v61 = vpop.permute.xlu1 %382 }
 0x341   :  { %v385_v62 = vmul.f32 %v383_v61, %v1225_v10  ;;  %v517_v61 = vld [vmem:[%s1453_s1 + $0x80] sm:$0xff] }
 0x343   :  { %387 = vrot.lane.b32.xlu1 %v385_v62, %s1162_s6  ;;  %v1077_v62 = vpack.c.bf16 %v517_v61, %v516_v60 }
 0x345   :  { %1078 = vmatpush3.bf16.msra.mxu0 %v1077_v62 }
 0x346   :  { %1097 = vmatprep.subr.bf16.mxu0 %v1157_v0 }
 0x347   :  { %392 = vrot.lane.b32.xlu1 %v1243_v15, %s1164_s22  ;;  %s1169_s22 = smov 112  }
 0x3b5   :  { %v388_v63 = vpop.permute.xlu1 %387 }
 0x3b6   :  { %v390_v1 = vadd.f32 %v388_v63, %v1282_v40 }
 0x3b8   :  { %1006 = vmatmul.mubr.msk.f32.vlgmr.msra.gmra.mrb[2].mxu1 %vm395_vm7, %v390_v1  ;;  %v520_v1 = vlaneseq }
 0x3b9   :  { %1041 = vmatprep.mubr.msk.f32.mxu1 %vm1158_vm0, %v1159_v4  ;;  %v393_v8 = vpop.permute.xlu1 %392  ;;  %1081 = vmatpush3.bf16.msra.mxu1 %v1080_v6 }
 0x3ba   :  { %v521_v9 = vshrl.u32 %v520_v1, 7  ;;  %1082 = vmatprep.subr.bf16.mxu1 %v1157_v0 }
 0x3bc   :  { %v522_v14 = vsub.s32 0, %v521_v9  ;;  %v526_v18 = vsub.s32 1, %v521_v9 }
 0x48b   :  { %v465_v11 = vpop.f32.mrb[2].mxu1 }
 0x48c   :  { %v1307_v12 = vadd.f32 %v465_v11, %v393_v8  ;;  %v1007_v13 = vpop.f32.mrb[3].mxu1  ;;  %v614_v8 = vld [vmem:[%s1453_s1 + $0xa0] sm:$0xff] }
 0x48d   :  { %v518_v11 = vld [vmem:[%s1455_s2] sm:$0x3]  ;;  %v1083_v13 = vpack.c.bf16 %v614_v8, %v613_v7 }
 0x48e   :  { %v472_v15 = vand.u32 2147483647, %v1307_v12  ;;  %v469_v37 = vmax.f32 %v1307_v12, 0.0  ;;  %vm470_vm11 = vcmp.ne.f32.partialorder %v1307_v12, %v1307_v12 }
 0x48f   :  { %1084 = vmatpush3.bf16.msra.mxu1 %v1083_v13 }
 0x490   :  { %v473_v16 = vsub.f32 0.0, %v472_v15  ;;  %v615_v15 = vld [vmem:[%s1453_s1 + $0xa8] sm:$0xff]  ;;  %1085 = vmatprep.subr.bf16.mxu1 %v1157_v0 }
 0x492   :  { %v474_v17 = vmul.f32 1.442695, %v473_v16  ;;  %v616_v16 = vld [vmem:[%s1453_s1 + $0xb0] sm:$0xff] }
 0x493   :  { %v1086_v19 = vpack.c.bf16 %v616_v16, %v615_v15 }
 0x494   :  { %1133 = vpow2.f32 %v474_v17  ;;  %v523_v17 = vrot.slane %v518_v11, %v522_v14 }
 0x495   :  { %1087 = vmatpush3.bf16.msra.mxu1 %v1086_v19 }
 0x496   :  { %1088 = vmatprep.subr.bf16.mxu1 %v1157_v0 }
 0x49e   :  { %v1134_v21 = vpop.eup %1133 }
 0x49f   :  { %v476_v24 = vadd.f32 1.0, %v1134_v21  ;;  %v479_v28 = vmul.f32 -0.5, %v1134_v21  ;;  %v482_v31 = vand.u32 2147483647, %v1134_v21 }
 0x4a1   :  { %1135 = vlog2.f32 %v476_v24  ;;  %v480_v30 = vadd.f32 1.0, %v479_v28  ;;  %vm483_vm10 = vcmp.lt.f32.partialorder %v482_v31, 0.0004427343  ;;  %v527_v24 = vrot.slane %v518_v11, %v526_v18  ;;  %v622_v31 = vld [vmem:[%s1453_s1 + $0xe0] sm:$0xff] }
 0x4a2   :  { %1137 = vpow2.f32 %v488_v41  ;;  %v1092_v28 = vpack.c.bf16 %v620_v27, %v619_v26 }
 0x4a3   :  { %v481_v35 = vmul.f32 %v1134_v21, %v480_v30  ;;  %v617_v21 = vld [vmem:[%s1453_s1 + $0xb8] sm:$0xff] }
 0x4a4   :  { %v1089_v25 = vpack.c.bf16 %v618_v22, %v617_v21  ;;  %v621_v30 = vld [vmem:[%s1453_s1 + $0xd8] sm:$0xff] }
 0x4a6   :  { %1090 = vmatpush3.bf16.msra.mxu1 %v1089_v25 }
 0x4a7   :  { %1091 = vmatprep.subr.bf16.mxu1 %v1157_v0 }
 0x4aa   :  { %1093 = vmatpush3.bf16.msra.mxu1 %v1092_v28 }
 0x4ab   :  { %v1136_v33 = vpop.eup %1135  ;;  %1094 = vmatprep.subr.bf16.mxu1 %v1157_v0 }
 0x4ac   :  { %v478_v34 = vmul.f32 0.6931472, %v1136_v33  ;;  %v1138_v45 = vpop.eup %1137  ;;  %v1095_v33 = vpack.c.bf16 %v622_v31, %v621_v30 }
 0x4ad   :  { %v496_v49 = vmul.f32 %v1138_v45, %v1304_v3 }
 0x4ae   :  { %v484_v38 = vsel %vm483_vm10, %v481_v35, %v478_v34  ;;  %1096 = vmatpush3.bf16.msra.mxu1 %v1095_v33  ;;  %v623_v34 = vld [vmem:[%s1453_s1 + $0xe8] sm:$0xf]  ;;  %v917_v35 = vld [vmem:[%s1455_s2 + $0x1] ss:$0 sm:$0xff] }
 0x4af   :  { %v485_v39 = vadd.f32 %v484_v38, %v469_v37  ;;  %1039 = vmatprep.subr.mxu1 %v1159_v4  ;;  %v715_v37 = vld [vmem:[%s1453_s1 + $0xf8] sm:$0xff] }
 0x4b1   :  { %v1321_v42 = vsel %vm470_vm11, %v1307_v12, %v485_v39 }
 0x4b2   :  { %v490_v43 = vsub.f32 0.0, %v1321_v42  ;;  %1040 = vmatpush3.msk.msra.mxu1 %vm637_vm12, %v623_v34 }
 0x4b4   :  { %v491_v44 = vmul.f32 1.442695, %v490_v43 }
 0x4b6   :  { %1139 = vpow2.f32 %v491_v44 }
 0x4c0   :  { %v1140_v46 = vpop.eup %1139 }
 0x4c1   :  { %v493_v47 = vadd.f32 %v1140_v46, %v1138_v45  ;;  %v497_v48 = vmul.f32 %v1140_v46, %v1307_v12 }
 0x4c3   :  { %1141 = vrcp.f32 %v493_v47  ;;  %v498_v50 = vadd.f32 %v497_v48, %v496_v49  ;;  %v716_v48 = vld [vmem:[%s1453_s1 + $0x100] sm:$0xff] }
 0x4cd   :  { %v1142_v51 = vpop.eup %1141 }
 0x4ce   :  { %v500_v52 = vadd.f32 1e-08, %v1142_v51  ;;  %v1326_v53 = vmul.f32 %v1142_v51, %v498_v50 }
 0x4d0   :  { %1143 = vlog2.f32 %v500_v52 }
 0x4da   :  { %v1144_v54 = vpop.eup %1143 }
 0x4db   :  { %v502_v55 = vmul.f32 0.6931472, %v1144_v54 }
 0x4dd   :  { %v503_v57 = vmul.f32 0.5, %v502_v55  ;;  %v903_v58 = vsel %vm286_vm4, %v502_v55, 0.0 }
 0x4de   :  { %905 = vst [vmem:[%s1456_s3 + $0x8] sm:$0xff] %v903_v58 }
 0x4df   :  { %v504_v59 = vmul.f32 1.442695, %v503_v57 }
 0x4e1   :  { %1145 = vpow2.f32 %v504_v59 }
 0x4eb   :  { %v1146_v63 = vpop.eup %1145 }
 0x4ec   :  { %507 = vrot.lane.b32.xlu0 %v1146_v63, %s1165_s0 }
 0x4f0   :  { %528 = vrot.lane.b32.xlu0 %v523_v17, %s1165_s0 }
 0x4f4   :  { %630 = vrot.lane.b32.xlu0 %v917_v35, %s1167_s16 }
 0x55e   :  { %v508_v20 = vpop.permute.xlu0 %507 }
 0x55f   :  { %v510_v23 = vmul.f32 %v508_v20, %v1225_v10 }
 0x561   :  { %512 = vrot.lane.b32.xlu1 %v510_v23, %s1166_s24  ;;  %s1172_s24 = smov 16  }
 0x562   :  { %v529_v39 = vpop.permute.xlu0 %528 }
 0x565   :  { %530 = vrot.lane.b32.xlu1 %v527_v24, %s1165_s0 }
 0x566   :  { %v631_v50 = vpop.permute.xlu0 %630 }
 0x569   :  { %718 = vrot.lane.b32.xlu1 %v917_v35, %s1168_s20 }
 0x5d3   :  { %v513_v10 = vpop.permute.xlu1 %512 }
 0x5d4   :  { %v515_v29 = vadd.f32 %v513_v10, %v1326_v53 }
 0x5d6   :  { %1013 = vmatmul.mubr.msk.f32.vlgmr.msra.gmra.mrb[6].mxu0 %vm286_vm4, %v515_v29 }
 0x5d7   :  { %1052 = vmatprep.mubr.msk.f32.mxu0 %vm1158_vm0, %v1159_v4  ;;  %v1098_v4 = vpack.c.bf16 %v715_v37, %v714_v36  ;;  %v531_v38 = vpop.permute.xlu1 %530 }
 0x5d8   :  { %v533_v41 = vsel %vm532_vm13, %v529_v39, %v531_v38 }
 0x5d9   :  { %1099 = vmatpush3.bf16.msra.mxu0 %v1098_v4 }
 0x5da   :  { %1100 = vmatprep.subr.bf16.mxu0 %v1157_v0  ;;  %v717_v0 = vld [vmem:[%s1453_s1 + $0x108] sm:$0xff]  ;;  %s1170_s1 = smov 120  }
 0x5db   :  { %v1101_v49 = vpack.c.bf16 %v717_v0, %v716_v48  ;;  %v719_v58 = vpop.permute.xlu1 %718 }
 0x5dd   :  { %1102 = vmatpush3.bf16.msra.mxu0 %v1101_v49 }
 0x6a9   :  { %v604_v43 = vpop.f32.mrb[6].mxu0 }
 0x6aa   :  { %v605_v44 = vadd.f32 %v604_v43, %v533_v41  ;;  %v1014_v45 = vpop.f32.mrb[7].mxu0 }
 0x6ac   :  { %vm608_vm14 = vcmp.gt.f32.partialorder %v605_v44, 0.0  ;;  %v609_v46 = vmul.f32 0.01, %v605_v44 }
 0x6ae   :  { %v610_v47 = vsel %vm608_vm14, %v605_v44, %v609_v46 }
 0x6af   :  { %1042 = vmatmul.mubr.msk.f32.vlgmr.msra.gmra.mrb[4].mxu1 %vm633_vm15, %v610_v47 }
 0x782   :  { %v707_v51 = vpop.f32.mrb[4].mxu1 }
 0x783   :  { %v708_v52 = vadd.f32 %v707_v51, %v631_v50  ;;  %v1043_v54 = vpop.f32.mrb[5].mxu1 }
 0x785   :  { %vm711_vm0 = vcmp.gt.f32.partialorder %v708_v52, 0.0  ;;  %v712_v55 = vmul.f32 0.01, %v708_v52 }
 0x787   :  { %v713_v57 = vsel %vm711_vm0, %v708_v52, %v712_v55 }
 0x788   :  { %1053 = vmatmul.mubr.msk.f32.vlgmr.msra.gmra.mrb[8].mxu0 %vm26_vm1, %v713_v57 }
 0x85b   :  { %v790_v59 = vpop.f32.mrb[8].mxu0 }
 0x85c   :  { %v1412_v60 = vadd.f32 %v790_v59, %v719_v58  ;;  %v1054_v61 = vpop.f32.mrb[9].mxu0 }
 0x85e   :  { %799 = vrot.lane.b32.xlu1 %v1412_v60, %s1169_s22  ;;  %795 = vrot.lane.b32.xlu0 %v1412_v60, %s1170_s1 }
 0x862   :  { %803 = vrot.lane.b32.xlu0 %v1412_v60, %s1171_s23 }
 0x8d0   :  { %v796_v62 = vpop.permute.xlu0 %795  ;;  %v800_v1 = vpop.permute.xlu1 %799 }
 0x8d1   :  { %v798_v63 = vmax.f32 %v1412_v60, %v796_v62 }
 0x8d3   :  { %v802_v2 = vmax.f32 %v798_v63, %v800_v1 }
 0x8d4   :  { %v804_v5 = vpop.permute.xlu0 %803 }
 0x8d5   :  { %v806_v6 = vmax.f32 %v802_v2, %v804_v5 }
 0x8d7   :  { %822 = vrot.lane.b32.xlu0 %v806_v6, %s1172_s24  ;;  %811 = vrot.lane.b32.xlu1 %v806_v6, %s1173_s25  ;;  %v807_v21 = vsub.f32 %v1412_v60, %v806_v6 }
 0x8d9   :  { %v808_v22 = vmul.f32 1.442695, %v807_v21 }
 0x8db   :  { %833 = vrot.lane.b32.xlu1 %v806_v6, %s1174_s26 }
 0x949   :  { %v823_v7 = vpop.permute.xlu0 %822  ;;  %v812_v8 = vpop.permute.xlu1 %811 }
 0x94a   :  { %v825_v9 = vsub.f32 %v1412_v60, %v823_v7  ;;  %v814_v11 = vsub.f32 %v1412_v60, %v812_v8 }
 0x94c   :  { %v826_v13 = vmul.f32 1.442695, %v825_v9  ;;  %v815_v14 = vmul.f32 1.442695, %v814_v11 }
 0x94d   :  { %v834_v15 = vpop.permute.xlu1 %833 }
 0x94e   :  { %1147 = vpow2.f32 %v826_v13  ;;  %v836_v16 = vsub.f32 %v1412_v60, %v834_v15 }
 0x94f   :  { %1149 = vpow2.f32 %v815_v14 }
 0x950   :  { %v837_v17 = vmul.f32 1.442695, %v836_v16 }
 0x952   :  { %1151 = vpow2.f32 %v837_v17 }
 0x953   :  { %1153 = vpow2.f32 %v808_v22 }
 0x958   :  { %v1148_v18 = vpop.eup %1147 }
 0x959   :  { %v1150_v19 = vpop.eup %1149  ;;  %829 = vrot.lane.b32.xlu1 %v1148_v18, %s1169_s22 }
 0x95a   :  { %818 = vrot.lane.b32.xlu0 %v1150_v19, %s1170_s1 }
 0x95c   :  { %v1152_v20 = vpop.eup %1151 }
 0x95d   :  { %867 = vrot.lane.b32.xlu1 %v1314_v32, %s1175_s27  ;;  %v1154_v23 = vpop.eup %1153 }
 0x95e   :  { %840 = vrot.lane.b32.xlu0 %v1152_v20, %s1171_s23 }
 0x962   :  { %863 = vrot.lane.b32.xlu0 %v1304_v3, %s1163_s21  ;;  %s1176_s21 = smov 72  }
 0x9cb   :  { %v830_v26 = vpop.permute.xlu1 %829 }
 0x9cc   :  { %v819_v24 = vpop.permute.xlu0 %818 }
 0x9cd   :  { %v821_v25 = vadd.f32 %v1154_v23, %v819_v24 }
 0x9cf   :  { %v832_v27 = vadd.f32 %v830_v26, %v821_v25  ;;  %v868_v3 = vpop.permute.xlu1 %867 }
 0x9d0   :  { %v841_v28 = vpop.permute.xlu0 %840 }
 0x9d1   :  { %v843_v10 = vadd.f32 %v841_v28, %v832_v27 }
 0x9d3   :  { %1155 = vlog2.f32 %v843_v10 }
 0x9d4   :  { %v864_v31 = vpop.permute.xlu0 %863 }
 0x9dd   :  { %v1156_v29 = vpop.eup %1155 }
 0x9de   :  { %v845_v30 = vmul.f32 0.6931472, %v1156_v29 }
 0x9e0   :  { %v846_v32 = vadd.f32 %v845_v30, %v806_v6 }
 0x9e2   :  { %851 = vrot.lane.b32.xlu0 %v846_v32, %s1172_s24  ;;  %848 = vrot.lane.b32.xlu1 %v846_v32, %s1173_s25 }
 0x9e6   :  { %871 = vrot.lane.b32.xlu0 %v1282_v40, %s1161_s5  ;;  %854 = vrot.lane.b32.xlu1 %v846_v32, %s1174_s26 }
 0x9ea   :  { %879 = vrot.lane.b32.xlu0 %v1307_v12, %s1160_s4  ;;  %875 = vrot.lane.b32.xlu1 %v1289_v56, %s1176_s21 }
 0x9ee   :  { %887 = vrot.lane.b32.xlu0 %v1326_v53, %s1169_s22  ;;  %883 = vrot.lane.b32.xlu1 %v1321_v42, %s1162_s6 }
 0xa54   :  { %v852_v33 = vpop.permute.xlu0 %851  ;;  %v849_v34 = vpop.permute.xlu1 %848 }
 0xa55   :  { %v857_v40 = vsel %vm395_vm7, %v846_v32, %v849_v34  ;;  %vm901_vm7 = vcmask 916480  }
 0xa56   :  { %v858_v36 = vsel %vm286_vm4, %v857_v40, %v852_v33 }
 0xa58   :  { %v872_v35 = vpop.permute.xlu0 %871  ;;  %v855_v12 = vpop.permute.xlu1 %854 }
 0xa59   :  { %v860_v37 = vsel %vm859_vm2, %v858_v36, %v855_v12 }
 0xa5a   :  { %v861_v56 = vsub.f32 %v1412_v60, %v860_v37 }
 0xa5c   :  { %v890_v53 = vsel %vm26_vm1, %v861_v56, %v864_v31  ;;  %v880_v4 = vpop.permute.xlu0 %879  ;;  %v876_v42 = vpop.permute.xlu1 %875 }
 0xa5d   :  { %v892_v38 = vsel %vm891_vm3, %v890_v53, %v868_v3 }
 0xa5e   :  { %v894_v39 = vsel %vm893_vm5, %v892_v38, %v872_v35 }
 0xa5f   :  { %v896_v41 = vsel %vm895_vm6, %v894_v39, %v876_v42 }
 0xa60   :  { %v888_v43 = vpop.permute.xlu0 %887  ;;  %v898_v44 = vsel %vm897_vm8, %v896_v41, %v880_v4  ;;  %v884_v45 = vpop.permute.xlu1 %883 }
 0xa61   :  { %v900_v46 = vsel %vm899_vm9, %v898_v44, %v884_v45 }
 0xa62   :  { %v902_v47 = vsel %vm901_vm7, %v900_v46, %v888_v43 }
 0xa63   :  { %904 = vst [vmem:[%s1456_s3] sm:$0xff] %v902_v47 }

</bundles_post_ra>
